<compile_context>
chip_gen: v6e
topology: v6e:2x2x1
jax: 0.10.0
libtpu: 0.0.40
codegen_flags: <defaults>
</compile_context>

<pallas_src>
import jax
import jax.numpy as jnp
from jax.experimental import pallas as pl
from jax.experimental.pallas import tpu as pltpu

# Logical layer sizes of the PyTorch module.
D_IN, H1, H2, H3, N_CLASSES = 13, 124, 64, 32, 3
# Lane-padded hidden sizes used inside the kernel (contraction/output of the
# three hidden matmuls). Input (13) and final output (3) stay un-padded.
H1_P, H2_P, H3_P = 128, 128, 128


def mlp_kernel(x_ref,
               w1_ref, b1_ref,
               w2_ref, b2_ref,
               w3_ref, b3_ref,
               w4_ref, b4_ref,
               o_ref):
    # bf16 matmuls on the MXU with f32 accumulation; elementwise math in f32.
    h = x_ref[...].astype(jnp.bfloat16)                       # (TB, 13)

    h = jnp.dot(h, w1_ref[...], preferred_element_type=jnp.float32) + b1_ref[...]
    h = jnp.maximum(h, 0.0).astype(jnp.bfloat16)              # (TB, 128)

    h = jnp.dot(h, w2_ref[...], preferred_element_type=jnp.float32) + b2_ref[...]
    h = jnp.maximum(h, 0.0).astype(jnp.bfloat16)              # (TB, 128)

    h = jnp.dot(h, w3_ref[...], preferred_element_type=jnp.float32) + b3_ref[...]
    h = jnp.maximum(h, 0.0).astype(jnp.bfloat16)              # (TB, 128)

    logits = jnp.dot(h, w4_ref[...], preferred_element_type=jnp.float32) + b4_ref[...]
    # logits: (TB, 3) -- no padded classes, so log_softmax needs no masking.
    m = jnp.max(logits, axis=-1, keepdims=True)
    shifted = logits - m
    lse = jnp.log(jnp.sum(jnp.exp(shifted), axis=-1, keepdims=True))
    o_ref[...] = (shifted - lse).astype(o_ref.dtype)


def _round_up(x, m):
    return (x + m - 1) // m * m


def pack_params(params):
    """Zero-pad weights to padded hidden dims, cast to bf16; biases -> (1, N) f32.

    Padded rows/cols are zero, so padded activations are exactly 0 after ReLU
    and contribute nothing downstream; results match the unpadded network.
    """
    dims = [(D_IN, H1_P), (H1_P, H2_P), (H2_P, H3_P), (H3_P, N_CLASSES)]
    packed = []
    for (w, b), (kin, kout) in zip(params, dims):
        wp = jnp.zeros((kin, kout), jnp.bfloat16)
        wp = wp.at[:w.shape[0], :w.shape[1]].set(w.astype(jnp.bfloat16))
        bp = jnp.zeros((1, kout), jnp.float32)
        bp = bp.at[0, :b.shape[0]].set(b.astype(jnp.float32))
        packed.append((wp, bp))
    return tuple(packed)


@jax.jit
def mlp_forward(x, packed_params):
    (w1, b1), (w2, b2), (w3, b3), (w4, b4) = packed_params
    B = x.shape[0]

    # Batch tile: big enough to amortize per-step overhead, multiple of 8
    # sublanes. For moderate/large batches, cap TB so there are >= 2 grid
    # steps (engages both TensorCores on v7x; harmless no-op on v5e/v6e).
    TB = min(1024, _round_up(B, 8))
    if B > 8:
        TB = min(TB, max(8, _round_up((B + 1) // 2, 8)))
    B_pad = _round_up(B, TB)

    # Only the batch axis is padded (feature dim stays 13, dtype stays f32:
    # the kernel casts to bf16 on the fly).
    if B_pad != B:
        x_p = jnp.zeros((B_pad, D_IN), x.dtype).at[:B].set(x)
    else:
        x_p = x

    def resident(shape):
        # Constant block index -> weights/biases stay in VMEM across all steps.
        return pl.BlockSpec(shape, lambda i: (0, 0))

    out = pl.pallas_call(
        mlp_kernel,
        out_shape=jax.ShapeDtypeStruct((B_pad, N_CLASSES), jnp.float32),
        grid=(B_pad // TB,),
        in_specs=[
            pl.BlockSpec((TB, D_IN), lambda i: (i, 0)),
            resident(w1.shape), resident(b1.shape),
            resident(w2.shape), resident(b2.shape),
            resident(w3.shape), resident(b3.shape),
            resident(w4.shape), resident(b4.shape),
        ],
        out_specs=pl.BlockSpec((TB, N_CLASSES), lambda i: (i, 0)),
        compiler_params=pltpu.CompilerParams(
            dimension_semantics=("parallel",)),
    )(x_p, w1, b1, w2, b2, w3, b3, w4, b4)

    return out[:B] if B_pad != B else out


def init_linear(key, fan_in, fan_out):
    # Deterministic init mimicking PyTorch's uniform(-1/sqrt(fan_in), ...).
    kw, kb = jax.random.split(key)
    bound = 1.0 / jnp.sqrt(float(fan_in))
    # Stored as (in, out) so the kernel does x @ W directly
    # (== PyTorch x @ W.T + b with W of shape (out, in)).
    w = jax.random.uniform(kw, (fan_in, fan_out), jnp.float32, -bound, bound)
    b = jax.random.uniform(kb, (fan_out,), jnp.float32, -bound, bound)
    return w, b


if __name__ == "__main__":
    key = jax.random.PRNGKey(0)
    k_x, k1, k2, k3, k4 = jax.random.split(key, 5)

    params = (
        init_linear(k1, D_IN, H1),
        init_linear(k2, H1, H2),
        init_linear(k3, H2, H3),
        init_linear(k4, H3, N_CLASSES),
    )
    packed = pack_params(params)

    batch = 8
    x = jax.random.normal(k_x, (batch, D_IN), jnp.float32)

    out = mlp_forward(x, packed)
    out = jax.block_until_ready(out)

    # Reference mirroring the kernel's numerics (bf16 weights/activations for
    # the matmuls, f32 accumulation and elementwise math).
    def ref(x, params):
        (w1, b1), (w2, b2), (w3, b3), (w4, b4) = params

        def lin(h, w, b):
            return jnp.dot(h.astype(jnp.bfloat16), w.astype(jnp.bfloat16),
                           preferred_element_type=jnp.float32) + b

        h = jnp.maximum(lin(x, w1, b1), 0.0)
        h = jnp.maximum(lin(h, w2, b2), 0.0)
        h = jnp.maximum(lin(h, w3, b3), 0.0)
        logits = lin(h, w4, b4)
        return jax.nn.log_softmax(logits, axis=-1)

    expected = ref(x, params)
    assert out.shape == (batch, N_CLASSES)
    assert jnp.allclose(out, expected, atol=2e-3, rtol=2e-3), (
        float(jnp.max(jnp.abs(out - expected))))

    print("KERNEL_OK")
</pallas_src>

<mosaic_0001>
module attributes {stable_mosaic.version = 11 : i64} {
  func.func @mlp_kernel(%arg0: i32, %arg1: memref<8x13xf32, #tpu.memory_space<vmem>>, %arg2: memref<13x128xbf16, #tpu.memory_space<vmem>>, %arg3: memref<1x128xf32, #tpu.memory_space<vmem>>, %arg4: memref<128x128xbf16, #tpu.memory_space<vmem>>, %arg5: memref<1x128xf32, #tpu.memory_space<vmem>>, %arg6: memref<128x128xbf16, #tpu.memory_space<vmem>>, %arg7: memref<1x128xf32, #tpu.memory_space<vmem>>, %arg8: memref<128x3xbf16, #tpu.memory_space<vmem>>, %arg9: memref<1x3xf32, #tpu.memory_space<vmem>>, %arg10: memref<8x3xf32, #tpu.memory_space<vmem>>) attributes {dimension_semantics = [#tpu.dimension_semantics<parallel>], iteration_bounds = array<i64: 1>, scalar_prefetch = 0 : i64, scratch_operands = 0 : i64, tpu.core_type = #tpu.core_type<tc>, window_params = [{transform_indices = @transform_0, window_bounds = array<i64: 8, 13>}, {pipeline_mode = #tpu.pipeline_mode<synchronous>, transform_indices = @transform_1, window_bounds = array<i64: 13, 128>}, {pipeline_mode = #tpu.pipeline_mode<synchronous>, transform_indices = @transform_2, window_bounds = array<i64: 1, 128>}, {pipeline_mode = #tpu.pipeline_mode<synchronous>, transform_indices = @transform_3, window_bounds = array<i64: 128, 128>}, {pipeline_mode = #tpu.pipeline_mode<synchronous>, transform_indices = @transform_4, window_bounds = array<i64: 1, 128>}, {pipeline_mode = #tpu.pipeline_mode<synchronous>, transform_indices = @transform_5, window_bounds = array<i64: 128, 128>}, {pipeline_mode = #tpu.pipeline_mode<synchronous>, transform_indices = @transform_6, window_bounds = array<i64: 1, 128>}, {pipeline_mode = #tpu.pipeline_mode<synchronous>, transform_indices = @transform_7, window_bounds = array<i64: 128, 3>}, {pipeline_mode = #tpu.pipeline_mode<synchronous>, transform_indices = @transform_8, window_bounds = array<i64: 1, 3>}, {transform_indices = @transform_9, window_bounds = array<i64: 8, 3>}]} {
    %c0 = arith.constant 0 : index
    %c0_0 = arith.constant 0 : index
    %0 = vector.load %arg1[%c0, %c0_0] : memref<8x13xf32, #tpu.memory_space<vmem>>, vector<8x13xf32>
    %1 = arith.truncf %0 : vector<8x13xf32> to vector<8x13xbf16>
    %c0_1 = arith.constant 0 : index
    %c0_2 = arith.constant 0 : index
    %2 = vector.load %arg2[%c0_1, %c0_2] : memref<13x128xbf16, #tpu.memory_space<vmem>>, vector<13x128xbf16>
    %cst = arith.constant dense<0.000000e+00> : vector<8x128xf32>
    %3 = tpu.matmul %1, %2, %cst {dimension_numbers = #tpu.dot_dimension_numbers<[1], [0], [0], [1], [0, 0, 1, 1], [], []>} : vector<8x13xbf16>, vector<13x128xbf16>, vector<8x128xf32> -> vector<8x128xf32>
    %c0_3 = arith.constant 0 : index
    %c0_4 = arith.constant 0 : index
    %4 = vector.load %arg3[%c0_3, %c0_4] : memref<1x128xf32, #tpu.memory_space<vmem>>, vector<1x128xf32>
    %5 = vector.broadcast %4 : vector<1x128xf32> to vector<8x128xf32>
    %6 = arith.addf %3, %5 : vector<8x128xf32>
    %cst_5 = arith.constant 0.000000e+00 : f32
    %7 = vector.broadcast %cst_5 : f32 to vector<8x128xf32>
    %8 = arith.maximumf %6, %7 : vector<8x128xf32>
    %9 = arith.truncf %8 : vector<8x128xf32> to vector<8x128xbf16>
    %c0_6 = arith.constant 0 : index
    %c0_7 = arith.constant 0 : index
    %10 = vector.load %arg4[%c0_6, %c0_7] : memref<128x128xbf16, #tpu.memory_space<vmem>>, vector<128x128xbf16>
    %cst_8 = arith.constant dense<0.000000e+00> : vector<8x128xf32>
    %11 = tpu.matmul %9, %10, %cst_8 {dimension_numbers = #tpu.dot_dimension_numbers<[1], [0], [0], [1], [0, 0, 1, 1], [], []>} : vector<8x128xbf16>, vector<128x128xbf16>, vector<8x128xf32> -> vector<8x128xf32>
    %c0_9 = arith.constant 0 : index
    %c0_10 = arith.constant 0 : index
    %12 = vector.load %arg5[%c0_9, %c0_10] : memref<1x128xf32, #tpu.memory_space<vmem>>, vector<1x128xf32>
    %13 = vector.broadcast %12 : vector<1x128xf32> to vector<8x128xf32>
    %14 = arith.addf %11, %13 : vector<8x128xf32>
    %cst_11 = arith.constant 0.000000e+00 : f32
    %15 = vector.broadcast %cst_11 : f32 to vector<8x128xf32>
    %16 = arith.maximumf %14, %15 : vector<8x128xf32>
    %17 = arith.truncf %16 : vector<8x128xf32> to vector<8x128xbf16>
    %c0_12 = arith.constant 0 : index
    %c0_13 = arith.constant 0 : index
    %18 = vector.load %arg6[%c0_12, %c0_13] : memref<128x128xbf16, #tpu.memory_space<vmem>>, vector<128x128xbf16>
    %cst_14 = arith.constant dense<0.000000e+00> : vector<8x128xf32>
    %19 = tpu.matmul %17, %18, %cst_14 {dimension_numbers = #tpu.dot_dimension_numbers<[1], [0], [0], [1], [0, 0, 1, 1], [], []>} : vector<8x128xbf16>, vector<128x128xbf16>, vector<8x128xf32> -> vector<8x128xf32>
    %c0_15 = arith.constant 0 : index
    %c0_16 = arith.constant 0 : index
    %20 = vector.load %arg7[%c0_15, %c0_16] : memref<1x128xf32, #tpu.memory_space<vmem>>, vector<1x128xf32>
    %21 = vector.broadcast %20 : vector<1x128xf32> to vector<8x128xf32>
    %22 = arith.addf %19, %21 : vector<8x128xf32>
    %cst_17 = arith.constant 0.000000e+00 : f32
    %23 = vector.broadcast %cst_17 : f32 to vector<8x128xf32>
    %24 = arith.maximumf %22, %23 : vector<8x128xf32>
    %25 = arith.truncf %24 : vector<8x128xf32> to vector<8x128xbf16>
    %c0_18 = arith.constant 0 : index
    %c0_19 = arith.constant 0 : index
    %26 = vector.load %arg8[%c0_18, %c0_19] : memref<128x3xbf16, #tpu.memory_space<vmem>>, vector<128x3xbf16>
    %cst_20 = arith.constant dense<0.000000e+00> : vector<8x3xf32>
    %27 = tpu.matmul %25, %26, %cst_20 {dimension_numbers = #tpu.dot_dimension_numbers<[1], [0], [0], [1], [0, 0, 1, 1], [], []>} : vector<8x128xbf16>, vector<128x3xbf16>, vector<8x3xf32> -> vector<8x3xf32>
    %c0_21 = arith.constant 0 : index
    %c0_22 = arith.constant 0 : index
    %28 = vector.load %arg9[%c0_21, %c0_22] : memref<1x3xf32, #tpu.memory_space<vmem>>, vector<1x3xf32>
    %29 = vector.broadcast %28 : vector<1x3xf32> to vector<8x3xf32>
    %30 = arith.addf %27, %29 : vector<8x3xf32>
    %cst_23 = arith.constant dense<0xFF800000> : vector<8xf32>
    %31 = vector.multi_reduction <maximumf>, %30, %cst_23 [1] : vector<8x3xf32> to vector<8xf32>
    %32 = vector.shape_cast %31 : vector<8xf32> to vector<8x1xf32>
    %33 = vector.broadcast %32 : vector<8x1xf32> to vector<8x3xf32>
    %34 = arith.subf %30, %33 : vector<8x3xf32>
    %35 = math.exp %34 : vector<8x3xf32>
    %cst_24 = arith.constant dense<0.000000e+00> : vector<8xf32>
    %36 = vector.multi_reduction <add>, %35, %cst_24 [1] : vector<8x3xf32> to vector<8xf32>
    %37 = vector.shape_cast %36 : vector<8xf32> to vector<8x1xf32>
    %38 = math.log %37 : vector<8x1xf32>
    %39 = vector.broadcast %38 : vector<8x1xf32> to vector<8x3xf32>
    %40 = arith.subf %34, %39 : vector<8x3xf32>
    %c0_25 = arith.constant 0 : index
    %c0_26 = arith.constant 0 : index
    %41 = vector.load %arg10[%c0_25, %c0_26] : memref<8x3xf32, #tpu.memory_space<vmem>>, vector<8x3xf32>
    tpu.vector_store %arg10[%c0_25, %c0_26], %40 {strides = array<i32>} : memref<8x3xf32, #tpu.memory_space<vmem>>, vector<8x3xf32>,
    return
  }
  func.func @transform_0(%arg0: i32) -> (i32, i32) {
    %c0_i32 = arith.constant 0 : i32
    %c0_i32_0 = arith.constant 0 : i32
    return %arg0, %c0_i32 : i32, i32
  }
  func.func @transform_1(%arg0: i32) -> (i32, i32) {
    %c0_i32 = arith.constant 0 : i32
    %c0_i32_0 = arith.constant 0 : i32
    %c0_i32_1 = arith.constant 0 : i32
    return %c0_i32, %c0_i32_0 : i32, i32
  }
  func.func @transform_2(%arg0: i32) -> (i32, i32) {
    %c0_i32 = arith.constant 0 : i32
    %c0_i32_0 = arith.constant 0 : i32
    %c0_i32_1 = arith.constant 0 : i32
    return %c0_i32, %c0_i32_0 : i32, i32
  }
  func.func @transform_3(%arg0: i32) -> (i32, i32) {
    %c0_i32 = arith.constant 0 : i32
    %c0_i32_0 = arith.constant 0 : i32
    %c0_i32_1 = arith.constant 0 : i32
    return %c0_i32, %c0_i32_0 : i32, i32
  }
  func.func @transform_4(%arg0: i32) -> (i32, i32) {
    %c0_i32 = arith.constant 0 : i32
    %c0_i32_0 = arith.constant 0 : i32
    %c0_i32_1 = arith.constant 0 : i32
    return %c0_i32, %c0_i32_0 : i32, i32
  }
  func.func @transform_5(%arg0: i32) -> (i32, i32) {
    %c0_i32 = arith.constant 0 : i32
    %c0_i32_0 = arith.constant 0 : i32
    %c0_i32_1 = arith.constant 0 : i32
    return %c0_i32, %c0_i32_0 : i32, i32
  }
  func.func @transform_6(%arg0: i32) -> (i32, i32) {
    %c0_i32 = arith.constant 0 : i32
    %c0_i32_0 = arith.constant 0 : i32
    %c0_i32_1 = arith.constant 0 : i32
    return %c0_i32, %c0_i32_0 : i32, i32
  }
  func.func @transform_7(%arg0: i32) -> (i32, i32) {
    %c0_i32 = arith.constant 0 : i32
    %c0_i32_0 = arith.constant 0 : i32
    %c0_i32_1 = arith.constant 0 : i32
    return %c0_i32, %c0_i32_0 : i32, i32
  }
  func.func @transform_8(%arg0: i32) -> (i32, i32) {
    %c0_i32 = arith.constant 0 : i32
    %c0_i32_0 = arith.constant 0 : i32
    %c0_i32_1 = arith.constant 0 : i32
    return %c0_i32, %c0_i32_0 : i32, i32
  }
  func.func @transform_9(%arg0: i32) -> (i32, i32) {
    %c0_i32 = arith.constant 0 : i32
    %c0_i32_0 = arith.constant 0 : i32
    return %arg0, %c0_i32 : i32, i32
  }
}

</mosaic_0001>

<bundles_post_ra>
// kernel: mlp_forward.1
= control target key start
LH: loop header
LB: loop body
LE: loop exit
PB: predicated region body
PF: predicated region fallthrough
CT: control target
= control target key end

     0   :  { %14 = vsyncpa [#allocation3], 0  ;;  %s890_s0 = inlined_call_operand.hbm [shape: f32[8,13], index: 0, kind: input, shape index: {}]   ;;  %s891_s1 = inlined_call_operand.hbm [shape: bf16[13,128], index: 1, kind: input, shape index: {}]   ;;  %s892_s2 = inlined_call_operand.vmem [shape: f32[1,128], index: 2, kind: input, shape index: {}]   ;;  %s893_s3 = inlined_call_operand.vmem [shape: bf16[128,128], index: 3, kind: input, shape index: {}]   ;;  %s894_s4 = inlined_call_operand.vmem [shape: f32[1,128], index: 4, kind: input, shape index: {}]   ;;  %s895_s5 = inlined_call_operand.hbm [shape: bf16[128,128], index: 5, kind: input, shape index: {}]   ;;  %s896_s6 = inlined_call_operand.vmem [shape: f32[1,128], index: 6, kind: input, shape index: {}]   ;;  %s897_s7 = inlined_call_operand.vmem [shape: bf16[128,3], index: 7, kind: input, shape index: {}]   ;;  %s898_s8 = inlined_call_operand.vmem [shape: f32[1,3], index: 8, kind: input, shape index: {}]   ;;  %s899_s9 = inlined_call_operand.vmem [shape: f32[8,3], index: 9, kind: output, shape index: {}]  }
   0x1   :  { %15 = vsyncpa [#allocation5], 0  ;;  %s724_s30 = smov [#allocation4]  }
   0x2   :  { %s31_s10 = sshll.u32 %s724_s30, 4  ;;  %s32_s10 = int_to_ptr.vmem [resolvable:$true] %s31_s10 }
   0x3   :  { %s668_s11 = scalar_lea.vmem %s32_s10, 128  ;;  %p673_p1 = scmp.lt.s32.totalorder %s32_s10, %s32_s10 }
   0x4   :  { %p669_p0 = scmp.ne.s32.totalorder %s32_s10, %s668_s11  ;;  %p674_p2 = scmp.lt.s32.totalorder %s668_s11, %s668_s11 }
   0x6   :  { %p675_p3 = por %p674_p2, %p673_p1 }
   0x8   :  { %p676_p4 = pnand %p675_p3, %p669_p0 }
   0xa   :  { %679 = shalt.err (!%p676_p4)
}
   0xb   :  { %s725_s12 = smov 64   ;;  %s726_s13 = smov 4  }
   0xc   :  { %37 = dma.hbm_to_vmem [thread:$0]  %s891_s1, 128, %s32_s10, [#allocation5], %s725_s12, %s725_s12, %s726_s13  }
   0xd   :  { %s727_s16 = smov [#allocation2]   ;;  %s728_s18 = smov [#allocation6]  }
   0xe   :  { %s22_s17 = sshll.u32 %s727_s16, 4  ;;  %s49_s19 = sshll.u32 %s728_s18, 4  ;;  %s23_s17 = int_to_ptr.vmem [resolvable:$true] %s22_s17  ;;  %s50_s19 = int_to_ptr.vmem [resolvable:$true] %s49_s19 }
   0xf   :  { %s688_s20 = scalar_lea.vmem %s23_s17, 128  ;;  %p693_p6 = scmp.lt.s32.totalorder %s23_s17, %s23_s17 }
  0x10   :  { %p689_p5 = scmp.ne.s32.totalorder %s23_s17, %s688_s20  ;;  %p694_p7 = scmp.lt.s32.totalorder %s688_s20, %s688_s20 }
  0x12   :  { %p695_p8 = por %p694_p7, %p693_p6 }
  0x14   :  { %p696_p9 = pnand %p695_p8, %p689_p5 }
  0x16   :  { %699 = shalt.err (!%p696_p9)
}
  0x17   :  { %25 = dma.hbm_to_vmem [thread:$0]  %s890_s0, 128, %s23_s17, [#allocation3]  }
  0x18   :  { %s708_s23 = scalar_lea.vmem %s50_s19, 1024  ;;  %p713_p11 = scmp.lt.s32.totalorder %s50_s19, %s50_s19 }
  0x19   :  { %p709_p10 = scmp.ne.s32.totalorder %s50_s19, %s708_s23  ;;  %p714_p12 = scmp.lt.s32.totalorder %s708_s23, %s708_s23 }
  0x1b   :  { %p715_p13 = por %p714_p12, %p713_p11 }
  0x1d   :  { %p716_p0 = pnand %p715_p13, %p709_p10 }
  0x1f   :  { %719 = shalt.err (!%p716_p0)
}
  0x20   :  { %55 = dma.hbm_to_vmem [thread:$0]  %s895_s5, 1024, %s50_s19, [#allocation5], %s725_s12, %s725_s12, %s726_s13  }
  0x21   :  { %720 = dma.done.wait [#allocation3], 128  }
  0x22   :  { %721 = vsyncadd [#allocation3], 4294967168 }
  0x23   :  { %722 = dma.done.wait [#allocation5], 1152  }
  0x24   :  { %723 = vsyncadd [#allocation5], 4294966144  ;;  %vm92_vm0 = vcmask 1045504   ;;  %v729_v0 = vmov 0.0   ;;  %vm730_vm1 = vmmov 0   ;;  %vm93_vm2 = vcmask 1046528  }
  0x25   :  { %557 = vmatprep.subr.bf16.mxu0 %v729_v0  ;;  %563 = vmatprep.subr.bf16.mxu1 %v729_v0  ;;  %v731_v1 = vmov 65535   ;;  %v631_v4 = vld [vmem:[#allocation4] sm:$0x7f]   ;;  %v72_v5 = vld [vmem:[#allocation2] sm:$0xff]  ;;  %v632_v7 = vld [vmem:[%s893_s3 + $0x38] sm:$0xff]   ;;  %vm88_vm3 = vcmask 105472  }
  0x26   :  { %559 = vmatprep.mubr.msk.bf16.mxu0 %vm730_vm1, %v729_v0  ;;  %579 = vmatprep.mubr.msk.bf16.mxu1 %vm730_vm1, %v729_v0  ;;  %v94_v2 = vsel %vm92_vm0, 4294967295, %v731_v1  ;;  %v73_v8 = vpack.c.bf16 %v72_v5, %v72_v5  ;;  %v633_v9 = vld [vmem:[%s893_s3 + $0x30] sm:$0xff]   ;;  %v634_v10 = vld [vmem:[%s893_s3 + $0x28] sm:$0xff]   ;;  %v635_v11 = vld [vmem:[%s893_s3 + $0x20] sm:$0xff]   ;;  %vm478_vm4 = vcmask 23552  }
  0x27   :  { %v95_v3 = vsel %vm93_vm2, %v94_v2, 0  ;;  %564 = vmatpush3.bf16.msra.mxu1 %v632_v7  ;;  %v636_v12 = vld [vmem:[%s893_s3 + $0x18] sm:$0xff]   ;;  %v637_v13 = vld [vmem:[%s893_s3 + $0x10] sm:$0xff]   ;;  %v638_v14 = vld [vmem:[%s893_s3 + $0x8] sm:$0xff]  }
  0x28   :  { %v97_v6 = vand.u32 %v631_v4, %v95_v3  ;;  %565 = vmatprep.subr.bf16.mxu1 %v729_v0  ;;  %v639_v15 = vld [vmem:[%s893_s3] sm:$0xff]   ;;  %v640_v16 = vld [vmem:[#allocation6 + $0x38] sm:$0xff]   ;;  %v642_v18 = vld [vmem:[#allocation6 + $0x28] sm:$0xff]  }
  0x29   :  { %v641_v17 = vld [vmem:[#allocation6 + $0x30] sm:$0xff]   ;;  %v643_v19 = vld [vmem:[#allocation6 + $0x20] sm:$0xff]   ;;  %v644_v20 = vld [vmem:[#allocation6 + $0x18] sm:$0xff]  }
  0x2a   :  { %558 = vmatpush3.bf16.msra.mxu0 %v97_v6  ;;  %v645_v21 = vld [vmem:[#allocation6 + $0x10] sm:$0xff]   ;;  %v646_v30 = vld [vmem:[#allocation6 + $0x8] sm:$0xff]   ;;  %v647_v31 = vld [vmem:[#allocation6] sm:$0xff]  }
  0x2b   :  { %583 = vmatprep.subr.bf16.mxu0 %v729_v0  ;;  %566 = vmatpush3.bf16.msra.mxu1 %v633_v9  ;;  %v498_v22 = vld [vmem:[%s892_s2] ss:$0 sm:$0xff]  ;;  %v648_v32 = vld [vmem:[%s897_s7 + $0x38] sm:$0xff]   ;;  %v649_v33 = vld [vmem:[%s897_s7 + $0x30] sm:$0xff]  }
  0x2c   :  { %567 = vmatprep.subr.bf16.mxu1 %v729_v0  ;;  %v650_v34 = vld [vmem:[%s897_s7 + $0x28] sm:$0xff]   ;;  %v651_v35 = vld [vmem:[%s897_s7 + $0x20] sm:$0xff]   ;;  %v652_v36 = vld [vmem:[%s897_s7 + $0x18] sm:$0xff]  }
  0x2d   :  { %560 = vmatmul.mubr.msk.bf16.vlgmr.msra.gmra.mxu0 %vm88_vm3, %v73_v8  ;;  %v653_v37 = vld [vmem:[%s897_s7 + $0x10] sm:$0xff]   ;;  %v501_v38 = vld [vmem:[%s894_s4] ss:$0 sm:$0xff]  ;;  %v654_v46 = vld [vmem:[%s897_s7 + $0x8] sm:$0xff]  }
  0x2e   :  { %599 = vmatprep.mubr.msk.bf16.mxu0 %vm730_vm1, %v729_v0  ;;  %584 = vmatpush3.bf16.msra.mxu0 %v640_v16  ;;  %v655_v47 = vld [vmem:[%s897_s7] sm:$0xff]  }
  0x2f   :  { %568 = vmatpush3.bf16.msra.mxu1 %v634_v10  ;;  %585 = vmatprep.subr.bf16.mxu0 %v729_v0  ;;  %v510_v48 = vld [vmem:[%s896_s6] ss:$0 sm:$0xff] }
  0x30   :  { %569 = vmatprep.subr.bf16.mxu1 %v729_v0  ;;  %v519_v56 = vld [vmem:[%s898_s8] ss:$0 sm:$0xff] }
  0x32   :  { %586 = vmatpush3.bf16.msra.mxu0 %v641_v17 }
  0x33   :  { %570 = vmatpush3.bf16.msra.mxu1 %v635_v11  ;;  %587 = vmatprep.subr.bf16.mxu0 %v729_v0 }
  0x34   :  { %571 = vmatprep.subr.bf16.mxu1 %v729_v0 }
  0x36   :  { %588 = vmatpush3.bf16.msra.mxu0 %v642_v18 }
  0x37   :  { %572 = vmatpush3.bf16.msra.mxu1 %v636_v12  ;;  %589 = vmatprep.subr.bf16.mxu0 %v729_v0 }
  0x38   :  { %573 = vmatprep.subr.bf16.mxu1 %v729_v0 }
  0x3a   :  { %590 = vmatpush3.bf16.msra.mxu0 %v643_v19 }
  0x3b   :  { %574 = vmatpush3.bf16.msra.mxu1 %v637_v13  ;;  %591 = vmatprep.subr.bf16.mxu0 %v729_v0 }
  0x3c   :  { %575 = vmatprep.subr.bf16.mxu1 %v729_v0 }
  0x3e   :  { %592 = vmatpush3.bf16.msra.mxu0 %v644_v20 }
  0x3f   :  { %576 = vmatpush3.bf16.msra.mxu1 %v638_v14  ;;  %593 = vmatprep.subr.bf16.mxu0 %v729_v0 }
  0x40   :  { %577 = vmatprep.subr.bf16.mxu1 %v729_v0 }
  0x42   :  { %594 = vmatpush3.bf16.msra.mxu0 %v645_v21 }
  0x43   :  { %578 = vmatpush3.bf16.msra.mxu1 %v639_v15  ;;  %595 = vmatprep.subr.bf16.mxu0 %v729_v0 }
  0x44   :  { %603 = vmatprep.subr.bf16.mxu1 %v729_v0 }
  0x46   :  { %596 = vmatpush3.bf16.msra.mxu0 %v646_v30 }
  0x47   :  { %597 = vmatprep.subr.bf16.mxu0 %v729_v0 }
  0x4a   :  { %598 = vmatpush3.bf16.msra.mxu0 %v647_v31 }
  0xed   :  { %v133_v23 = vpop.f32.mrf.mxu0 }
  0xee   :  { %v134_v24 = vadd.f32 %v498_v22, %v133_v23 }
  0xef   :  { %v561_v25 = vpop.f32.mrf.mxu0 }
  0xf0   :  { %v139_v26 = vmax.f32 %v134_v24, 0.0 }
  0xf1   :  { %v136_v27 = vpop.f32.mrf.mxu0 }
  0xf2   :  { %v140_v28 = vpack.c.bf16 %v139_v26, %v139_v26 }
  0xf3   :  { %v562_v29 = vpop.f32.mrf.mxu0 }
  0xf4   :  { %580 = vmatmul.mubr.bf16.vlgmr.msra.gmra.mxu1 %v140_v28 }
  0xf5   :  { %619 = vmatprep.mubr.msk.bf16.mxu1 %vm730_vm1, %v729_v0  ;;  %604 = vmatpush3.bf16.msra.mxu1 %v648_v32 }
  0xf6   :  { %605 = vmatprep.subr.bf16.mxu1 %v729_v0 }
  0xf9   :  { %606 = vmatpush3.bf16.msra.mxu1 %v649_v33 }
  0xfa   :  { %607 = vmatprep.subr.bf16.mxu1 %v729_v0 }
  0xfd   :  { %608 = vmatpush3.bf16.msra.mxu1 %v650_v34 }
  0xfe   :  { %609 = vmatprep.subr.bf16.mxu1 %v729_v0 }
 0x101   :  { %610 = vmatpush3.bf16.msra.mxu1 %v651_v35 }
 0x102   :  { %611 = vmatprep.subr.bf16.mxu1 %v729_v0 }
 0x105   :  { %612 = vmatpush3.bf16.msra.mxu1 %v652_v36 }
 0x106   :  { %613 = vmatprep.subr.bf16.mxu1 %v729_v0 }
 0x109   :  { %614 = vmatpush3.bf16.msra.mxu1 %v653_v37 }
 0x10a   :  { %615 = vmatprep.subr.bf16.mxu1 %v729_v0 }
 0x10d   :  { %616 = vmatpush3.bf16.msra.mxu1 %v654_v46 }
 0x10e   :  { %617 = vmatprep.subr.bf16.mxu1 %v729_v0 }
 0x111   :  { %618 = vmatpush3.bf16.msra.mxu1 %v655_v47 }
 0x1b4   :  { %v246_v39 = vpop.f32.mrf.mxu1 }
 0x1b5   :  { %v247_v40 = vadd.f32 %v501_v38, %v246_v39 }
 0x1b6   :  { %v581_v41 = vpop.f32.mrf.mxu1 }
 0x1b7   :  { %v252_v42 = vmax.f32 %v247_v40, 0.0 }
 0x1b8   :  { %v249_v43 = vpop.f32.mrf.mxu1 }
 0x1b9   :  { %v253_v44 = vpack.c.bf16 %v252_v42, %v252_v42 }
 0x1ba   :  { %v582_v45 = vpop.f32.mrf.mxu1 }
 0x1bb   :  { %600 = vmatmul.mubr.bf16.vlgmr.msra.gmra.mxu0 %v253_v44 }
 0x27b   :  { %v359_v49 = vpop.f32.mrf.mxu0 }
 0x27c   :  { %v360_v50 = vadd.f32 %v510_v48, %v359_v49 }
 0x27d   :  { %v601_v51 = vpop.f32.mrf.mxu0 }
 0x27e   :  { %v365_v52 = vmax.f32 %v360_v50, 0.0 }
 0x27f   :  { %v362_v53 = vpop.f32.mrf.mxu0 }
 0x280   :  { %v366_v54 = vpack.c.bf16 %v365_v52, %v365_v52 }
 0x281   :  { %v602_v55 = vpop.f32.mrf.mxu0 }
 0x282   :  { %620 = vmatmul.mubr.bf16.vlgmr.msra.gmra.mxu1 %v366_v54 }
 0x342   :  { %v472_v57 = vpop.f32.mrf.mxu1 }
 0x343   :  { %v473_v58 = vadd.f32 %v519_v56, %v472_v57 }
 0x344   :  { %v621_v59 = vpop.f32.mrf.mxu1 }
 0x345   :  { %v479_v60 = vsel %vm478_vm4, %v473_v58, -inf }
 0x346   :  { %480 = vmax.xlane.f32.xlu0 %v479_v60  ;;  %v475_v61 = vpop.f32.mrf.mxu1 }
 0x348   :  { %v622_v62 = vpop.f32.mrf.mxu1 }
 0x3cf   :  { %v481_v63 = vpop.xlane.xlu0 %480 }
 0x3d0   :  { %v482_v0 = vsub.f32 %v473_v58, %v481_v63 }
 0x3d2   :  { %v483_v1 = vmul.f32 1.442695, %v482_v0 }
 0x3d4   :  { %656 = vpow2.f32 %v483_v1 }
 0x3e1   :  { %v657_v2 = vpop.eup %656 }
 0x3e2   :  { %v485_v3 = vsel %vm478_vm4, %v657_v2, 0.0 }
 0x3e3   :  { %486 = vadd.xlane.f32.xlu0 %v485_v3 }
 0x46c   :  { %v487_v4 = vpop.xlane.xlu0 %486 }
 0x46d   :  { %658 = vlog2.f32 %v487_v4 }
 0x47a   :  { %v659_v5 = vpop.eup %658 }
 0x47b   :  { %v489_v6 = vmul.f32 0.6931472, %v659_v5 }
 0x47d   :  { %v490_v7 = vsub.f32 %v482_v0, %v489_v6 }
 0x47f   :  { %491 = vst.msk [vmem:[%s899_s9] sm:$0xff] %vm478_vm4, %v490_v7 }
 0x480   :  { %496 = vsyncpa [#allocation3], 1 }
 0x481   :  { %497 = vsyncpa [#allocation5], 1 }

</bundles_post_ra>
